<compile_context>
chip_gen: v5e
topology: v5e:2x2
jax: 0.10.0
libtpu: 0.0.40
codegen_flags: <defaults>
</compile_context>

<pallas_src>
import jax
import jax.numpy as jnp
from jax.experimental import pallas as pl
from jax.experimental.pallas import tpu as pltpu

INPUT_DIM = 16
HIDDEN_DIM = 64
NUM_ACTIONS = 2
BATCH = 8
OUT_PAD = 128                 # lane-dense output slab width (>=128 -> unmasked stores)
HEADS_DIM = 2 * HIDDEN_DIM    # fused actor|critic hidden width = 128

# ---- packed parameter slab layout: (SLAB_ROWS, 128) f32, one DMA per call ----
B1_ROW = 0                    # b1 in lanes [0:64)
B2_ROW = 1                    # [ba1 | bc1]
B3_ROW = 2                    # lanes 0..1 = ba2, lane 2 = bc2
W1_ROW = 8                    # rows [8, 24):  w1 (16, 64) in lanes [0:64)
W2_ROW = 24                   # rows [24, 88): [wa1 | wc1] (64, 128)
W3_ROW = 88                   # rows [88, 216): block-diag heads layer 2 (128, 128)
SLAB_ROWS = W3_ROW + HEADS_DIM  # 216 (multiple of 8; every weight block 8-row aligned)


def actor_critic_kernel(x_ref, p_ref, out_ref):
    prec = jax.lax.Precision.HIGHEST
    x = x_ref[...]                                              # (TM, INPUT_DIM)

    # shared trunk: Linear + ReLU  (static ref views into the packed slab)
    w1 = p_ref[W1_ROW:W1_ROW + INPUT_DIM, :HIDDEN_DIM]          # (16, 64)
    b1 = p_ref[B1_ROW:B1_ROW + 1, :HIDDEN_DIM]                  # (1, 64)
    h = jnp.dot(x, w1, preferred_element_type=jnp.float32, precision=prec) + b1
    h = jnp.maximum(h, 0.0)

    # fused actor/critic first layers: one lane-dense (TM, 128) tile
    #   lanes 0..63  -> actor hidden (ReLU), lanes 64..127 -> critic hidden (ReLU)
    w2 = p_ref[W2_ROW:W2_ROW + HIDDEN_DIM, :]                   # (64, 128)
    b2 = p_ref[B2_ROW:B2_ROW + 1, :]                            # (1, 128)
    t = jnp.dot(h, w2, preferred_element_type=jnp.float32, precision=prec) + b2
    t = jnp.maximum(t, 0.0)

    # fused second layers via block-diagonal weight (single MXU pass):
    #   z[:, 0:2] = actor_hidden @ wa2 + ba2   (logits)
    #   z[:, 2:3] = critic_hidden @ wc2 + bc2  (state value)
    #   z[:, 3:]  = 0
    w3 = p_ref[W3_ROW:W3_ROW + HEADS_DIM, :]                    # (128, 128)
    b3 = p_ref[B3_ROW:B3_ROW + 1, :]                            # (1, 128)
    z = jnp.dot(t, w3, preferred_element_type=jnp.float32, precision=prec) + b3

    # in-slab masked softmax over the logit lanes (lanes [0, NUM_ACTIONS));
    # value lane passes through untouched.  Logit lanes are always finite, so
    # exp(-inf - m) = 0 and no NaNs can appear.
    lane = jax.lax.broadcasted_iota(jnp.int32, z.shape, 1)
    is_logit = lane < NUM_ACTIONS
    zl = jnp.where(is_logit, z, -jnp.inf)
    m = jnp.max(zl, axis=-1, keepdims=True)
    e = jnp.exp(zl - m)                                         # masked lanes -> 0
    denom = jnp.sum(e, axis=-1, keepdims=True)
    probs = e * pl.reciprocal(denom, approx=False)              # exact 1/x for 1e-5 parity

    out_ref[...] = jnp.where(is_logit, probs, z)                # single full-lane store


def actor_critic_forward(x, param_slab, *, tile_m=None, return_packed=False):
    """x: (B, INPUT_DIM) f32. param_slab: (SLAB_ROWS, 128) f32 from pack_params().

    tile_m=None (or >= B): grid-less single invocation (right call at tiny B).
    tile_m=<rows>:         1-D "parallel" grid over the batch axis for rollout-style
                           batches (use multiples of 256 on v6e/v7x, 128 on v5e).
    Returns (action_probs (B, NUM_ACTIONS), state_value (B, 1)), or the raw
    (B, OUT_PAD) slab if return_packed=True (lanes 0..1 probs, lane 2 value).
    """
    B = x.shape[0]
    vmem = pl.BlockSpec(memory_space=pltpu.MemorySpace.VMEM)

    if tile_m is None or tile_m >= B:
        # Whole-array VMEM refs: no grid, no pipeline prologue/epilogue,
        # no double-buffer allocation for a ~110 KB working set.
        out = pl.pallas_call(
            actor_critic_kernel,
            out_shape=jax.ShapeDtypeStruct((B, OUT_PAD), jnp.float32),
            in_specs=[vmem, vmem],
            out_specs=vmem,
        )(x, param_slab)
    else:
        pad = (-B) % tile_m
        x_in = jnp.pad(x, ((0, pad), (0, 0))) if pad else x
        bp = B + pad
        out = pl.pallas_call(
            actor_critic_kernel,
            out_shape=jax.ShapeDtypeStruct((bp, OUT_PAD), jnp.float32),
            grid=(bp // tile_m,),
            in_specs=[
                pl.BlockSpec((tile_m, INPUT_DIM), lambda i: (i, 0)),
                # constant block index -> slab is DMA'd once and kept resident
                pl.BlockSpec((SLAB_ROWS, 128), lambda i: (0, 0)),
            ],
            out_specs=pl.BlockSpec((tile_m, OUT_PAD), lambda i: (i, 0)),
            compiler_params=pltpu.CompilerParams(
                dimension_semantics=("parallel",)),   # shards across v7x's 2 TCs
        )(x_in, param_slab)
        out = out[:B]

    if return_packed:
        return out
    probs = out[:, :NUM_ACTIONS]
    value = out[:, NUM_ACTIONS:NUM_ACTIONS + 1]
    return probs, value


def init_params(key):
    """torch.nn.Linear-style init: uniform(-1/sqrt(fan_in), +1/sqrt(fan_in)).
    Weights stored as (in_features, out_features); biases as (1, out_features)."""
    def linear(key, fan_in, fan_out):
        kw, kb = jax.random.split(key)
        bound = 1.0 / jnp.sqrt(fan_in)
        w = jax.random.uniform(kw, (fan_in, fan_out), jnp.float32, -bound, bound)
        b = jax.random.uniform(kb, (1, fan_out), jnp.float32, -bound, bound)
        return w, b

    k1, k2, k3, k4, k5 = jax.random.split(key, 5)
    w1, b1 = linear(k1, INPUT_DIM, HIDDEN_DIM)      # shared
    wa1, ba1 = linear(k2, HIDDEN_DIM, HIDDEN_DIM)   # actor layer 1
    wa2, ba2 = linear(k3, HIDDEN_DIM, NUM_ACTIONS)  # actor layer 2
    wc1, bc1 = linear(k4, HIDDEN_DIM, HIDDEN_DIM)   # critic layer 1
    wc2, bc2 = linear(k5, HIDDEN_DIM, 1)            # critic layer 2
    return (w1, b1, wa1, ba1, wa2, ba2, wc1, bc1, wc2, bc2)


def pack_params(params):
    """One-time packing of every weight/bias into a single lane-dense slab."""
    (w1, b1, wa1, ba1, wa2, ba2, wc1, bc1, wc2, bc2) = params
    slab = jnp.zeros((SLAB_ROWS, 128), jnp.float32)

    # merged biases
    slab = slab.at[B1_ROW, :HIDDEN_DIM].set(b1[0])
    slab = slab.at[B2_ROW, :HIDDEN_DIM].set(ba1[0])
    slab = slab.at[B2_ROW, HIDDEN_DIM:].set(bc1[0])
    slab = slab.at[B3_ROW, :NUM_ACTIONS].set(ba2[0])
    slab = slab.at[B3_ROW, NUM_ACTIONS].set(bc2[0, 0])

    # trunk weight
    slab = slab.at[W1_ROW:W1_ROW + INPUT_DIM, :HIDDEN_DIM].set(w1)

    # fused heads layer 1: [wa1 | wc1]
    slab = slab.at[W2_ROW:W2_ROW + HIDDEN_DIM, :HIDDEN_DIM].set(wa1)
    slab = slab.at[W2_ROW:W2_ROW + HIDDEN_DIM, HIDDEN_DIM:].set(wc1)

    # fused heads layer 2: block-diagonal (actor rows -> lanes 0..1, critic rows -> lane 2)
    slab = slab.at[W3_ROW:W3_ROW + HIDDEN_DIM, :NUM_ACTIONS].set(wa2)
    slab = slab.at[W3_ROW + HIDDEN_DIM:W3_ROW + HEADS_DIM,
                   NUM_ACTIONS:NUM_ACTIONS + 1].set(wc2)
    return slab


def reference_forward(x, params):
    """Pure-JAX reference matching torch semantics (HIGHEST precision dots)."""
    (w1, b1, wa1, ba1, wa2, ba2, wc1, bc1, wc2, bc2) = params
    prec = jax.lax.Precision.HIGHEST
    dot = lambda a, b: jnp.dot(a, b, precision=prec)
    h = jax.nn.relu(dot(x, w1) + b1)
    a = jax.nn.relu(dot(h, wa1) + ba1)
    probs = jax.nn.softmax(dot(a, wa2) + ba2, axis=-1)
    c = jax.nn.relu(dot(h, wc1) + bc1)
    value = dot(c, wc2) + bc2
    return probs, value


if __name__ == "__main__":
    key = jax.random.PRNGKey(0)
    kx, kp, kb = jax.random.split(key, 3)

    params = init_params(kp)
    slab = pack_params(params)   # pack once, reuse across calls

    # --- small-batch path (grid-less, the shape this module actually runs at) ---
    x = jax.random.normal(kx, (BATCH, INPUT_DIM), dtype=jnp.float32)
    probs, value = actor_critic_forward(x, slab)
    jax.block_until_ready((probs, value))

    ref_probs, ref_value = reference_forward(x, params)
    assert probs.shape == (BATCH, NUM_ACTIONS)
    assert value.shape == (BATCH, 1)
    assert jnp.allclose(probs, ref_probs, atol=1e-5, rtol=1e-5)
    assert jnp.allclose(value, ref_value, atol=1e-5, rtol=1e-5)
    assert jnp.allclose(jnp.sum(probs, axis=-1), 1.0, atol=1e-5)

    # --- batched rollout path (parallel batch grid; 128-row tiles keep this small) ---
    BIG = 256
    xb = jax.random.normal(kb, (BIG, INPUT_DIM), dtype=jnp.float32)
    probs_b, value_b = actor_critic_forward(xb, slab, tile_m=128)
    jax.block_until_ready((probs_b, value_b))

    ref_probs_b, ref_value_b = reference_forward(xb, params)
    assert probs_b.shape == (BIG, NUM_ACTIONS)
    assert value_b.shape == (BIG, 1)
    assert jnp.allclose(probs_b, ref_probs_b, atol=1e-5, rtol=1e-5)
    assert jnp.allclose(value_b, ref_value_b, atol=1e-5, rtol=1e-5)

    print("KERNEL_OK")
</pallas_src>

<mosaic_0001>
module attributes {stable_mosaic.version = 11 : i64} {
  func.func @actor_critic_kernel(%arg0: memref<8x16xf32, #tpu.memory_space<vmem>>, %arg1: memref<216x128xf32, #tpu.memory_space<vmem>>, %arg2: memref<8x128xf32, #tpu.memory_space<vmem>>) attributes {dimension_semantics = [], scalar_prefetch = 0 : i64, scratch_operands = 0 : i64, tpu.core_type = #tpu.core_type<tc>} {
    %c0 = arith.constant 0 : index
    %c0_0 = arith.constant 0 : index
    %0 = vector.load %arg0[%c0, %c0_0] : memref<8x16xf32, #tpu.memory_space<vmem>>, vector<8x16xf32>
    %c8 = arith.constant 8 : index
    %c0_1 = arith.constant 0 : index
    %1 = vector.load %arg1[%c8, %c0_1] : memref<216x128xf32, #tpu.memory_space<vmem>>, vector<16x64xf32>
    %c0_2 = arith.constant 0 : index
    %c0_3 = arith.constant 0 : index
    %2 = vector.load %arg1[%c0_2, %c0_3] : memref<216x128xf32, #tpu.memory_space<vmem>>, vector<1x64xf32>
    %cst = arith.constant dense<0.000000e+00> : vector<8x64xf32>
    %3 = tpu.matmul %0, %1, %cst {dimension_numbers = #tpu.dot_dimension_numbers<[1], [0], [0], [1], [0, 0, 1, 1], [], []>, precision = #tpu.contract_precision<fp32>} : vector<8x16xf32>, vector<16x64xf32>, vector<8x64xf32> -> vector<8x64xf32>
    %4 = vector.broadcast %2 : vector<1x64xf32> to vector<8x64xf32>
    %5 = arith.addf %3, %4 : vector<8x64xf32>
    %cst_4 = arith.constant 0.000000e+00 : f32
    %6 = vector.broadcast %cst_4 : f32 to vector<8x64xf32>
    %7 = arith.maximumf %5, %6 : vector<8x64xf32>
    %c24 = arith.constant 24 : index
    %c0_5 = arith.constant 0 : index
    %8 = vector.load %arg1[%c24, %c0_5] : memref<216x128xf32, #tpu.memory_space<vmem>>, vector<64x128xf32>
    %c1 = arith.constant 1 : index
    %c0_6 = arith.constant 0 : index
    %9 = vector.load %arg1[%c1, %c0_6] : memref<216x128xf32, #tpu.memory_space<vmem>>, vector<1x128xf32>
    %cst_7 = arith.constant dense<0.000000e+00> : vector<8x128xf32>
    %10 = tpu.matmul %7, %8, %cst_7 {dimension_numbers = #tpu.dot_dimension_numbers<[1], [0], [0], [1], [0, 0, 1, 1], [], []>, precision = #tpu.contract_precision<fp32>} : vector<8x64xf32>, vector<64x128xf32>, vector<8x128xf32> -> vector<8x128xf32>
    %11 = vector.broadcast %9 : vector<1x128xf32> to vector<8x128xf32>
    %12 = arith.addf %10, %11 : vector<8x128xf32>
    %cst_8 = arith.constant 0.000000e+00 : f32
    %13 = vector.broadcast %cst_8 : f32 to vector<8x128xf32>
    %14 = arith.maximumf %12, %13 : vector<8x128xf32>
    %c88 = arith.constant 88 : index
    %c0_9 = arith.constant 0 : index
    %15 = vector.load %arg1[%c88, %c0_9] : memref<216x128xf32, #tpu.memory_space<vmem>>, vector<128x128xf32>
    %c2 = arith.constant 2 : index
    %c0_10 = arith.constant 0 : index
    %16 = vector.load %arg1[%c2, %c0_10] : memref<216x128xf32, #tpu.memory_space<vmem>>, vector<1x128xf32>
    %cst_11 = arith.constant dense<0.000000e+00> : vector<8x128xf32>
    %17 = tpu.matmul %14, %15, %cst_11 {dimension_numbers = #tpu.dot_dimension_numbers<[1], [0], [0], [1], [0, 0, 1, 1], [], []>, precision = #tpu.contract_precision<fp32>} : vector<8x128xf32>, vector<128x128xf32>, vector<8x128xf32> -> vector<8x128xf32>
    %18 = vector.broadcast %16 : vector<1x128xf32> to vector<8x128xf32>
    %19 = arith.addf %17, %18 : vector<8x128xf32>
    %20 = tpu.iota {dimensions = array<i32: 1>} : vector<8x128xi32>
    %c2_i32 = arith.constant 2 : i32
    %21 = vector.broadcast %c2_i32 : i32 to vector<8x128xi32>
    %22 = arith.cmpi slt, %20, %21 : vector<8x128xi32>
    %cst_12 = arith.constant 0xFF800000 : f32
    %23 = vector.broadcast %cst_12 : f32 to vector<8x128xf32>
    %24 = arith.select %22, %19, %23 : vector<8x128xi1>, vector<8x128xf32>
    %cst_13 = arith.constant dense<0xFF800000> : vector<8xf32>
    %25 = vector.multi_reduction <maximumf>, %24, %cst_13 [1] : vector<8x128xf32> to vector<8xf32>
    %26 = vector.shape_cast %25 : vector<8xf32> to vector<8x1xf32>
    %27 = vector.broadcast %26 : vector<8x1xf32> to vector<8x128xf32>
    %28 = arith.subf %24, %27 : vector<8x128xf32>
    %29 = math.exp %28 : vector<8x128xf32>
    %cst_14 = arith.constant dense<0.000000e+00> : vector<8xf32>
    %30 = vector.multi_reduction <add>, %29, %cst_14 [1] : vector<8x128xf32> to vector<8xf32>
    %31 = vector.shape_cast %30 : vector<8xf32> to vector<8x1xf32>
    %32 = tpu.reciprocal %31 : vector<8x1xf32> -> vector<8x1xf32>
    %33 = vector.broadcast %32 : vector<8x1xf32> to vector<8x128xf32>
    %34 = arith.mulf %29, %33 : vector<8x128xf32>
    %35 = arith.select %22, %34, %19 : vector<8x128xi1>, vector<8x128xf32>
    %c0_15 = arith.constant 0 : index
    %c0_16 = arith.constant 0 : index
    %36 = vector.load %arg2[%c0_15, %c0_16] : memref<8x128xf32, #tpu.memory_space<vmem>>, vector<8x128xf32>
    tpu.vector_store %arg2[%c0_15, %c0_16], %35 {strides = array<i32>} : memref<8x128xf32, #tpu.memory_space<vmem>>, vector<8x128xf32>,
    return
  }
}

</mosaic_0001>

<bundles_post_ra>
// kernel: tpu_custom_call.1
= control target key start
LH: loop header
LB: loop body
LE: loop exit
PB: predicated region body
PF: predicated region fallthrough
CT: control target
= control target key end

     0   :  { %7 = vsyncpa [#allocation3], 0  ;;  %s1223_s0 = inlined_call_operand.hbm [shape: f32[8,16], index: 0, kind: input, shape index: {}]   ;;  %s1224_s1 = inlined_call_operand.hbm [shape: f32[216,128], index: 1, kind: input, shape index: {}]   ;;  %s1225_s2 = inlined_call_operand.hbm [shape: f32[8,128], index: 2, kind: output, shape index: {}]  }
   0x1   :  { %8 = vsyncpa [#allocation6], 0 }
   0x2   :  { %9 = vsyncpa [#allocation4], 0  ;;  %s15_s11 = sshll.u32 %s1223_s0, 4  ;;  %s958_s12 = smov [#allocation2]   ;;  %s16_s11 = int_to_ptr.hbm [resolvable:$true] %s15_s11 }
   0x3   :  { %s17_s13 = sshll.u32 %s958_s12, 4  ;;  %s25_s16 = sshll.u32 %s1224_s1, 4  ;;  %s18_s13 = int_to_ptr.vmem [resolvable:$true] %s17_s13  ;;  %s26_s16 = int_to_ptr.hbm [resolvable:$true] %s25_s16 }
   0x4   :  { %20 = dma.hbm_to_vmem [thread:$0]  %s16_s11, 128, %s18_s13, [#allocation3]  }
   0x5   :  { %s959_s17 = smov [#allocation5]   ;;  %s960_s19 = smov 128  }
   0x6   :  { %s27_s18 = sshll.u32 %s959_s17, 4  ;;  %s961_s20 = smov 8   ;;  %s28_s18 = int_to_ptr.vmem [resolvable:$true] %s27_s18 }
   0x7   :  { %33 = dma.hbm_to_vmem [thread:$0]  %s26_s16, 3456, %s28_s18, [#allocation6], %s960_s19, %s960_s19, %s961_s20  }
   0x8   :  { %952 = dma.done.wait [#allocation3], 128  }
   0x9   :  { %953 = vsyncadd [#allocation3], 4294967168 }
   0xa   :  { %954 = dma.done.wait [#allocation6], 3456  }
   0xb   :  { %955 = vsyncadd [#allocation6], 4294963840  ;;  %vm47_vm0 = vcmask 130048   ;;  %v44_v0 = vld [vmem:[#allocation5 + $0x10] sm:$0xff]  ;;  %v43_v1 = vld [vmem:[#allocation5 + $0x8] sm:$0xff]  ;;  %vm221_vm1 = vcmask 523264  }
   0xc   :  { %v42_v2 = vld [vmem:[#allocation2] sm:$0xff]  ;;  %v65_v3 = vand.u32 4294901760, %v44_v0  ;;  %v67_v4 = vand.u32 4294901760, %v43_v1  ;;  %v218_v19 = vld [vmem:[#allocation5 + $0x50] sm:$0xff]  ;;  %v217_v21 = vld [vmem:[#allocation5 + $0x48] sm:$0xff]  ;;  %s962_s0 = smov [#allocation7]  }
   0xd   :  { %v49_v5 = vsel %vm47_vm0, %v42_v2, 0  ;;  %v984_v20 = vand.u32 4294901760, %v218_v19  ;;  %v989_v23 = vand.u32 4294901760, %v217_v21  ;;  %v216_v24 = vld [vmem:[#allocation5 + $0x40] sm:$0xff]  ;;  %v215_v28 = vld [vmem:[#allocation5 + $0x38] sm:$0xff]  ;;  %v214_v33 = vld [vmem:[#allocation5 + $0x30] sm:$0xff] }
   0xe   :  { %v69_v6 = vand.u32 4294901760, %v49_v5  ;;  %66 = vmatpush.msra.mxu2 %v65_v3  ;;  %v93_v7 = vsub.f32 %v44_v0, %v65_v3  ;;  %v99_v8 = vsub.f32 %v43_v1, %v67_v4  ;;  %202 = vmatpush.msra.mxu1 %v65_v3  ;;  %v997_v27 = vand.u32 4294901760, %v216_v24  ;;  %v213_v39 = vld [vmem:[#allocation5 + $0x28] sm:$0xff]  ;;  %v212_v45 = vld [vmem:[#allocation5 + $0x20] sm:$0xff]  ;;  %v211_v51 = vld [vmem:[#allocation5 + $0x18] sm:$0xff]  ;;  %s855_s1 = sshll.u32 %s962_s0, 4  ;;  %s856_s1 = int_to_ptr.vmem [resolvable:$true] %s855_s1 }
   0xf   :  { %v987_v22 = vsub.f32 %v218_v19, %v984_v20  ;;  %v995_v26 = vsub.f32 %v217_v21, %v989_v23  ;;  %v1007_v32 = vand.u32 4294901760, %v215_v28  ;;  %v241_v38 = vand.u32 4294901760, %v214_v33  ;;  %v472_v21 = vld [vmem:[#allocation5 + $0xa0] sm:$0xff]  ;;  %s857_s23 = sshll.u32 %s1225_s2, 4  ;;  %s858_s23 = int_to_ptr.hbm [resolvable:$true] %s857_s23 }
  0x10   :  { %v70_v9 = vsub.f32 %v49_v5, %v69_v6  ;;  %68 = vmatpush.msra.mxu2 %v67_v4  ;;  %v94_v10 = vand.u32 4294901760, %v93_v7  ;;  %v100_v11 = vand.u32 4294901760, %v99_v8  ;;  %204 = vmatpush.msra.mxu1 %v67_v4  ;;  %v1005_v31 = vsub.f32 %v216_v24, %v997_v27 }
  0x11   :  { %206 = vmatmul.f32.vlgmr.msra.gmra.mxu1 %v69_v6  ;;  %v268_v25 = vand.u32 4294901760, %v987_v22  ;;  %v274_v30 = vand.u32 4294901760, %v995_v26  ;;  %v285_v37 = vsub.f32 %v215_v28, %v1007_v32  ;;  %v243_v43 = vand.u32 4294901760, %v213_v39 }
  0x12   :  { %v71_v12 = vand.u32 4294901760, %v70_v9  ;;  %125 = vmatpush.msrb.mxu2 %v93_v7  ;;  %v95_v13 = vsub.f32 %v93_v7, %v94_v10  ;;  %v101_v14 = vsub.f32 %v99_v8, %v100_v11  ;;  %177 = vmatpush.msra.mxu0 %v94_v10  ;;  %v280_v36 = vand.u32 4294901760, %v1005_v31  ;;  %v478_v7 = vld [vmem:[#allocation5 + $0xd0] sm:$0xff] }
  0x13   :  { %366 = vmatpush.msrb.mxu1 %v984_v20  ;;  %v269_v29 = vsub.f32 %v987_v22, %v268_v25  ;;  %v275_v35 = vsub.f32 %v995_v26, %v274_v30  ;;  %v286_v42 = vand.u32 4294901760, %v285_v37  ;;  %v291_v44 = vsub.f32 %v214_v33, %v241_v38 }
  0x14   :  { %v72_v15 = vsub.f32 %v70_v9, %v71_v12  ;;  %128 = vmatpush.msrb.mxu2 %v99_v8  ;;  %v96_v16 = vand.u32 4294901760, %v95_v13  ;;  %v102_v17 = vand.u32 4294901760, %v101_v14  ;;  %181 = vmatpush.msra.mxu0 %v100_v11  ;;  %v281_v41 = vsub.f32 %v1005_v31, %v280_v36  ;;  %v477_v8 = vld [vmem:[#allocation5 + $0xc8] sm:$0xff]  ;;  %v475_v14 = vld [vmem:[#allocation5 + $0xb8] sm:$0xff] }
  0x15   :  { %183 = vmatmul.f32.vlgmr.msra.gmra.mxu0 %v69_v6  ;;  %368 = vmatpush.msrb.mxu1 %v989_v23  ;;  %v270_v34 = vand.u32 4294901760, %v269_v29  ;;  %v276_v40 = vand.u32 4294901760, %v275_v35  ;;  %v287_v47 = vsub.f32 %v285_v37, %v286_v42  ;;  %v297_v48 = vsub.f32 %v213_v39, %v243_v43 }
  0x16   :  { %v73_v18 = vand.u32 4294901760, %v72_v15  ;;  %97 = vmatpush.msra.mxu3 %v96_v16  ;;  %329 = vmatpush.msrb.mxu0 %v987_v22  ;;  %v282_v46 = vand.u32 4294901760, %v281_v41  ;;  %v245_v49 = vand.u32 4294901760, %v212_v45  ;;  %v292_v50 = vand.u32 4294901760, %v291_v44  ;;  %v474_v15 = vld [vmem:[#allocation5 + $0xb0] sm:$0xff]  ;;  %v473_v16 = vld [vmem:[#allocation5 + $0xa8] sm:$0xff] }
  0x17   :  { %370 = vmatpush.msrb.mxu1 %v997_v27  ;;  %v288_v52 = vand.u32 4294901760, %v287_v47  ;;  %v298_v53 = vand.u32 4294901760, %v297_v48  ;;  %v247_v55 = vand.u32 4294901760, %v211_v51  ;;  %v1023_v11 = vand.u32 4294901760, %v478_v7  ;;  %v470_v47 = vld [vmem:[#allocation5 + $0x90] sm:$0xff] }
  0x18   :  { %74 = vmatmul.f32.vlgmr.msra.gmra.mxu2 %v73_v18  ;;  %103 = vmatpush.msra.mxu3 %v102_v17  ;;  %v303_v54 = vsub.f32 %v212_v45, %v245_v49  ;;  %v293_v56 = vsub.f32 %v291_v44, %v292_v50  ;;  %v1029_v18 = vand.u32 4294901760, %v475_v14  ;;  %v1031_v19 = vand.u32 4294901760, %v474_v15 }
  0x19   :  { %105 = vmatmul.f32.vlgmr.msra.gmra.mxu3 %v69_v6  ;;  %234 = vmatpush.msra.mxu2 %v984_v20  ;;  %v299_v57 = vsub.f32 %v297_v48, %v298_v53  ;;  %v309_v59 = vsub.f32 %v211_v51, %v247_v55 }
  0x1a   :  { %150 = vmatpush.msrb.mxu3 %v65_v3  ;;  %332 = vmatpush.msrb.mxu0 %v995_v26  ;;  %v304_v58 = vand.u32 4294901760, %v303_v54  ;;  %v294_v60 = vand.u32 4294901760, %v293_v56  ;;  %v873_v3 = vld [vmem:[#allocation5] ss:$0 sm:$0xff]  ;;  %v1046_v28 = vsub.f32 %v475_v14, %v1029_v18  ;;  %v1049_v29 = vsub.f32 %v474_v15, %v1031_v19 }
  0x1b   :  { %236 = vmatpush.msra.mxu2 %v989_v23  ;;  %372 = vmatpush.msrb.mxu1 %v1007_v32  ;;  %v300_v61 = vand.u32 4294901760, %v299_v57  ;;  %v310_v63 = vand.u32 4294901760, %v309_v59 }
  0x1c   :  { %152 = vmatpush.msrb.mxu3 %v67_v4  ;;  %335 = vmatpush.msrb.mxu0 %v1005_v31  ;;  %v305_v62 = vsub.f32 %v303_v54, %v304_v58  ;;  %v1054_v31 = vand.u32 4294901760, %v472_v21 }
  0x1d   :  { %238 = vmatpush.msra.mxu2 %v997_v27  ;;  %374 = vmatpush.msrb.mxu1 %v241_v38  ;;  %v311_v1 = vsub.f32 %v309_v59, %v310_v63 }
  0x1e   :  { %271 = vmatpush.msra.mxu3 %v270_v34  ;;  %338 = vmatpush.msrb.mxu0 %v285_v37  ;;  %v306_v0 = vand.u32 4294901760, %v305_v62  ;;  %v542_v37 = vand.u32 4294901760, %v1046_v28  ;;  %v1063_v39 = vsub.f32 %v472_v21, %v1054_v31 }
  0x1f   :  { %240 = vmatpush.msra.mxu2 %v1007_v32  ;;  %376 = vmatpush.msrb.mxu1 %v243_v43  ;;  %v312_v2 = vand.u32 4294901760, %v311_v1  ;;  %v466_v1 = vld [vmem:[#allocation5 + $0x70] sm:$0xff] }
  0x20   :  { %131 = vmatmul.f32.vlgmr.msrb.gmra.mxu2 %v70_v9  ;;  %277 = vmatpush.msra.mxu3 %v276_v40  ;;  %v476_v9 = vld [vmem:[#allocation5 + $0xc0] sm:$0xff]  ;;  %v560_v56 = vand.u32 4294901760, %v1063_v39  ;;  %v1117_v15 = vand.u32 4294901760, %v466_v1 }
  0x21   :  { %156 = vmatmul.f32.vlgmr.msrb.gmra.mxu3 %v71_v12  ;;  %242 = vmatpush.msra.mxu2 %v241_v38  ;;  %v1025_v12 = vand.u32 4294901760, %v477_v8  ;;  %v1027_v13 = vand.u32 4294901760, %v476_v9 }
  0x22   :  { %341 = vmatpush.msrb.mxu0 %v291_v44  ;;  %283 = vmatpush.msra.mxu3 %v282_v46  ;;  %v543_v44 = vsub.f32 %v1046_v28, %v542_v37  ;;  %v471_v46 = vld [vmem:[#allocation5 + $0x98] sm:$0xff] }
  0x23   :  { %244 = vmatpush.msra.mxu2 %v243_v43  ;;  %378 = vmatpush.msrb.mxu1 %v245_v49  ;;  %v1039_v24 = vsub.f32 %v477_v8, %v1025_v12  ;;  %v561_v8 = vsub.f32 %v1063_v39, %v560_v56 }
  0x24   :  { %344 = vmatpush.msrb.mxu0 %v297_v48  ;;  %289 = vmatpush.msra.mxu3 %v288_v52  ;;  %v469_v48 = vld [vmem:[#allocation5 + $0x88] sm:$0xff]  ;;  %v468_v52 = vld [vmem:[#allocation5 + $0x80] sm:$0xff] }
  0x25   :  { %246 = vmatpush.msra.mxu2 %v245_v49  ;;  %380 = vmatpush.msrb.mxu1 %v247_v55  ;;  %v530_v34 = vand.u32 4294901760, %v1039_v24 }
  0x26   :  { %347 = vmatpush.msrb.mxu0 %v303_v54  ;;  %295 = vmatpush.msra.mxu3 %v294_v60  ;;  %v1089_v60 = vand.u32 4294901760, %v469_v48 }
  0x27   :  { %248 = vmatpush.msra.mxu2 %v247_v55 }
  0x28   :  { %350 = vmatpush.msrb.mxu0 %v309_v59  ;;  %301 = vmatpush.msra.mxu3 %v300_v61  ;;  %v1087_v59 = vand.u32 4294901760, %v470_v47  ;;  %v544_v61 = vand.u32 4294901760, %v543_v44 }
  0x29   :  { %399 = vmatpush.msrb.mxu2 %v268_v25  ;;  %v1042_v25 = vsub.f32 %v476_v9, %v1027_v13 }
  0x2a   :  { %307 = vmatpush.msra.mxu3 %v306_v0  ;;  %482 = vmatpush.msra.mxu0 %v1023_v11 }
  0x2b   :  { %403 = vmatpush.msrb.mxu2 %v274_v30  ;;  %v536_v35 = vand.u32 4294901760, %v1042_v25 }
  0x2c   :  { %313 = vmatpush.msra.mxu3 %v312_v2  ;;  %484 = vmatpush.msra.mxu0 %v1025_v12 }
  0x2d   :  { %407 = vmatpush.msrb.mxu2 %v280_v36 }
  0x2e   :  { %442 = vmatpush.msrb.mxu3 %v984_v20  ;;  %v1033_v20 = vand.u32 4294901760, %v473_v16  ;;  %486 = vmatpush.msra.mxu0 %v1027_v13 }
  0x2f   :  { %411 = vmatpush.msrb.mxu2 %v286_v42  ;;  %v531_v42 = vsub.f32 %v1039_v24, %v530_v34 }
  0x30   :  { %444 = vmatpush.msrb.mxu3 %v989_v23  ;;  %v1036_v23 = vsub.f32 %v478_v7, %v1023_v11  ;;  %v1052_v30 = vsub.f32 %v473_v16, %v1033_v20  ;;  %488 = vmatpush.msra.mxu0 %v1029_v18 }
  0x31   :  { %415 = vmatpush.msrb.mxu2 %v292_v50  ;;  %v532_v51 = vand.u32 4294901760, %v531_v42 }
  0x32   :  { %446 = vmatpush.msrb.mxu3 %v997_v27  ;;  %v524_v33 = vand.u32 4294901760, %v1036_v23  ;;  %v554_v45 = vand.u32 4294901760, %v1052_v30  ;;  %490 = vmatpush.msra.mxu0 %v1031_v19 }
  0x33   :  { %419 = vmatpush.msrb.mxu2 %v298_v53  ;;  %v467_v53 = vld [vmem:[#allocation5 + $0x78] sm:$0xff] }
  0x34   :  { %448 = vmatpush.msrb.mxu3 %v1007_v32  ;;  %v525_v41 = vsub.f32 %v1036_v23, %v524_v33  ;;  %v555_v62 = vsub.f32 %v1052_v30, %v554_v45  ;;  %v1096_v0 = vand.u32 4294901760, %v467_v53  ;;  %492 = vmatpush.msra.mxu0 %v1033_v20 }
  0x35   :  { %423 = vmatpush.msrb.mxu2 %v304_v58  ;;  %v1084_v58 = vand.u32 4294901760, %v471_v46 }
  0x36   :  { %450 = vmatpush.msrb.mxu3 %v241_v38  ;;  %v548_v38 = vand.u32 4294901760, %v1049_v29  ;;  %v526_v50 = vand.u32 4294901760, %v525_v41  ;;  %494 = vmatpush.msra.mxu0 %v1054_v31  ;;  %v1134_v41 = vsub.f32 %v466_v1, %v1117_v15  ;;  %v464_v1 = vld [vmem:[#allocation5 + $0x60] sm:$0xff] }
  0x37   :  { %427 = vmatpush.msrb.mxu2 %v310_v63  ;;  %v1094_v63 = vand.u32 4294901760, %v468_v52 }
  0x38   :  { %452 = vmatpush.msrb.mxu3 %v243_v43  ;;  %v537_v43 = vsub.f32 %v1042_v25, %v536_v35  ;;  %527 = vmatpush.msra.mxu1 %v526_v50  ;;  %v596_v50 = vand.u32 4294901760, %v1134_v41 }
  0x39   :  { %v1115_v14 = vsub.f32 %v468_v52, %v1094_v63  ;;  %496 = vmatpush.msra.mxu0 %v1084_v58 }
  0x3a   :  { %454 = vmatpush.msrb.mxu3 %v245_v49  ;;  %v538_v54 = vand.u32 4294901760, %v537_v43  ;;  %533 = vmatpush.msra.mxu1 %v532_v51 }
  0x3b   :  { %498 = vmatpush.msra.mxu0 %v1087_v59 }
  0x3c   :  { %456 = vmatpush.msrb.mxu3 %v247_v55  ;;  %v549_v55 = vsub.f32 %v1049_v29, %v548_v38  ;;  %539 = vmatpush.msra.mxu1 %v538_v54  ;;  %v597_v54 = vsub.f32 %v1134_v41, %v596_v50 }
  0x3d   :  { %500 = vmatpush.msra.mxu0 %v1089_v60 }
  0x3e   :  { %v550_v7 = vand.u32 4294901760, %v549_v55  ;;  %545 = vmatpush.msra.mxu1 %v544_v61  ;;  %v465_v61 = vld [vmem:[#allocation5 + $0x68] sm:$0xff] }
  0x3f   :  { %502 = vmatpush.msra.mxu0 %v1094_v63 }
  0x40   :  { %551 = vmatpush.msra.mxu1 %v550_v7  ;;  %v463_v7 = vld [vmem:[#allocation5 + $0x58] sm:$0xff] }
  0x41   :  { %504 = vmatpush.msra.mxu0 %v1096_v0 }
  0x43   :  { %506 = vmatpush.msra.mxu0 %v1117_v15 }
  0x8e   :  { %v207_v36 = vpop.f32.mrf.mxu1 }
  0x92   :  { %v184_v27 = vpop.f32.mrf.mxu0 }
  0x9b   :  { %v75_v4 = vpop.f32.mrf.mxu2 }
  0x9c   :  { %v106_v5 = vpop.f32.mrf.mxu3  ;;  %v76_v6 = vadd.f32 %v873_v3, %v75_v4  ;;  %v1099_v3 = vsub.f32 %v471_v46, %v1084_v58  ;;  %v1102_v4 = vsub.f32 %v470_v47, %v1087_v59 }
  0x9e   :  { %v107_v10 = vadd.f32 %v106_v5, %v76_v6  ;;  %v1106_v5 = vsub.f32 %v469_v48, %v1089_v60  ;;  %v566_v9 = vand.u32 4294901760, %v1099_v3 }
  0xa0   :  { %v567_v21 = vsub.f32 %v1099_v3, %v566_v9 }
  0xa2   :  { %v568_v43 = vand.u32 4294901760, %v567_v21 }
  0xa3   :  { %v132_v17 = vpop.f32.mrf.mxu2 }
  0xa4   :  { %v133_v22 = vadd.f32 %v132_v17, %v107_v10  ;;  %v157_v26 = vpop.f32.mrf.mxu3  ;;  %v572_v10 = vand.u32 4294901760, %v1102_v4  ;;  %v556_v17 = vand.u32 4294901760, %v555_v62  ;;  %v507_v62 = vand.u32 4294901760, %v465_v61 }
  0xa6   :  { %v158_v32 = vadd.f32 %v157_v26, %v133_v22  ;;  %v578_v22 = vand.u32 4294901760, %v1106_v5  ;;  %v1125_v26 = vsub.f32 %v467_v53, %v1096_v0  ;;  %557 = vmatpush.msra.mxu1 %v556_v17  ;;  %508 = vmatpush.msra.mxu0 %v507_v62  ;;  %v511_v17 = vand.u32 4294901760, %v463_v7 }
  0xa8   :  { %v185_v40 = vadd.f32 %v184_v27, %v158_v32  ;;  %v562_v32 = vand.u32 4294901760, %v561_v8  ;;  %v579_v44 = vsub.f32 %v1106_v5, %v578_v22  ;;  %v590_v46 = vand.u32 4294901760, %v1125_v26 }
  0xaa   :  { %v208_v49 = vadd.f32 %v207_v36, %v185_v40  ;;  %v573_v36 = vsub.f32 %v1102_v4, %v572_v10  ;;  %v584_v40 = vand.u32 4294901760, %v1115_v14  ;;  %563 = vmatpush.msra.mxu1 %v562_v32  ;;  %v580_v51 = vand.u32 4294901760, %v579_v44 }
  0xab   :  { %v591_v52 = vsub.f32 %v1125_v26, %v590_v46  ;;  %v613_v32 = vsub.f32 %v463_v7, %v511_v17 }
  0xac   :  { %v210_v57 = vmax.f32 %v208_v49, 0.0  ;;  %v574_v48 = vand.u32 4294901760, %v573_v36  ;;  %v585_v49 = vsub.f32 %v1115_v14, %v584_v40  ;;  %569 = vmatpush.msra.mxu1 %v568_v43 }
  0xad   :  { %v592_v55 = vand.u32 4294901760, %v591_v52  ;;  %v614_v43 = vand.u32 4294901760, %v613_v32 }
  0xae   :  { %v223_v2 = vsel %vm221_vm1, %v210_v57, 0  ;;  %575 = vmatpush.msra.mxu1 %v574_v48  ;;  %v586_v53 = vand.u32 4294901760, %v585_v49  ;;  %v598_v57 = vand.u32 4294901760, %v597_v54 }
  0xaf   :  { %v249_v6 = vand.u32 4294901760, %v223_v2 }
  0xb0   :  { %581 = vmatpush.msra.mxu1 %v580_v51 }
  0xb1   :  { %315 = vmatmul.f32.vlgmr.msra.gmra.mxu3 %v249_v6  ;;  %v250_v16 = vsub.f32 %v223_v2, %v249_v6  ;;  %v601_v2 = vsub.f32 %v465_v61, %v507_v62 }
  0xb2   :  { %678 = vmatpush.msra.mxu3 %v1023_v11  ;;  %587 = vmatpush.msra.mxu1 %v586_v53 }
  0xb3   :  { %353 = vmatmul.f32.vlgmr.msrb.gmra.mxu0 %v250_v16  ;;  %v251_v27 = vand.u32 4294901760, %v250_v16  ;;  %v602_v8 = vand.u32 4294901760, %v601_v2 }
  0xb4   :  { %680 = vmatpush.msra.mxu3 %v1025_v12  ;;  %593 = vmatpush.msra.mxu1 %v592_v55 }
  0xb5   :  { %v252_v42 = vsub.f32 %v250_v16, %v251_v27  ;;  %384 = vmatmul.f32.vlgmr.msrb.gmra.mxu1 %v251_v27  ;;  %v603_v21 = vsub.f32 %v601_v2, %v602_v8 }
  0xb6   :  { %682 = vmatpush.msra.mxu3 %v1027_v13  ;;  %599 = vmatpush.msra.mxu1 %v598_v57 }
  0xb7   :  { %v253_v47 = vand.u32 4294901760, %v252_v42  ;;  %v604_v36 = vand.u32 4294901760, %v603_v21 }
  0xb8   :  { %684 = vmatpush.msra.mxu3 %v1029_v18 }
  0xb9   :  { %254 = vmatmul.f32.vlgmr.msra.gmra.mxu2 %v253_v47  ;;  %458 = vmatmul.f32.vlgmr.msrb.gmra.mxu3 %v249_v6  ;;  %v615_v47 = vsub.f32 %v613_v32, %v614_v43 }
  0xba   :  { %625 = vmatpush.msra.mxu2 %v1036_v23  ;;  %686 = vmatpush.msra.mxu3 %v1031_v19 }
  0xbb   :  { %605 = vmatpush.msra.mxu1 %v604_v36  ;;  %v616_v48 = vand.u32 4294901760, %v615_v47 }
  0xbc   :  { %628 = vmatpush.msra.mxu2 %v1039_v24  ;;  %688 = vmatpush.msra.mxu3 %v1033_v20 }
  0xbe   :  { %631 = vmatpush.msra.mxu2 %v1042_v25  ;;  %690 = vmatpush.msra.mxu3 %v1054_v31 }
  0xc0   :  { %634 = vmatpush.msra.mxu2 %v1046_v28  ;;  %692 = vmatpush.msra.mxu3 %v1084_v58 }
  0xc1   :  { %429 = vmatmul.f32.vlgmr.msrb.gmra.mxu2 %v249_v6  ;;  %v509_v6 = vand.u32 4294901760, %v464_v1 }
  0xc2   :  { %637 = vmatpush.msra.mxu2 %v1049_v29  ;;  %694 = vmatpush.msra.mxu3 %v1087_v59 }
  0xc3   :  { %v607_v16 = vsub.f32 %v464_v1, %v509_v6  ;;  %510 = vmatpush.msra.mxu0 %v509_v6 }
  0xc4   :  { %640 = vmatpush.msra.mxu2 %v1052_v30  ;;  %696 = vmatpush.msra.mxu3 %v1089_v60 }
  0xc5   :  { %v608_v27 = vand.u32 4294901760, %v607_v16  ;;  %512 = vmatpush.msra.mxu0 %v511_v17 }
  0xc6   :  { %643 = vmatpush.msra.mxu2 %v1063_v39  ;;  %698 = vmatpush.msra.mxu3 %v1094_v63 }
  0xc7   :  { %719 = vmatpush.msrb.mxu0 %v524_v33  ;;  %v609_v42 = vsub.f32 %v607_v16, %v608_v27 }
  0xc8   :  { %646 = vmatpush.msra.mxu2 %v1099_v3  ;;  %700 = vmatpush.msra.mxu3 %v1096_v0 }
  0xc9   :  { %723 = vmatpush.msrb.mxu0 %v530_v34  ;;  %v610_v44 = vand.u32 4294901760, %v609_v42 }
  0xca   :  { %649 = vmatpush.msra.mxu2 %v1102_v4  ;;  %702 = vmatpush.msra.mxu3 %v1117_v15 }
  0xcb   :  { %727 = vmatpush.msrb.mxu0 %v536_v35  ;;  %611 = vmatpush.msra.mxu1 %v610_v44 }
  0xcc   :  { %652 = vmatpush.msra.mxu2 %v1106_v5  ;;  %704 = vmatpush.msra.mxu3 %v507_v62 }
  0xcd   :  { %731 = vmatpush.msrb.mxu0 %v542_v37  ;;  %617 = vmatpush.msra.mxu1 %v616_v48 }
  0xce   :  { %655 = vmatpush.msra.mxu2 %v1115_v14  ;;  %706 = vmatpush.msra.mxu3 %v509_v6 }
  0xcf   :  { %786 = vmatpush.msrb.mxu1 %v1023_v11  ;;  %735 = vmatpush.msrb.mxu0 %v548_v38  ;;  %v874_v11 = vld [vmem:[#allocation5 + $0x1] ss:$0 sm:$0xff] }
  0xd0   :  { %658 = vmatpush.msra.mxu2 %v1125_v26  ;;  %708 = vmatpush.msra.mxu3 %v511_v17 }
  0xd1   :  { %788 = vmatpush.msrb.mxu1 %v1025_v12  ;;  %739 = vmatpush.msrb.mxu0 %v554_v45  ;;  %v875_v45 = vld [vmem:[#allocation5 + $0x2] ss:$0 sm:$0xff] }
  0xd2   :  { %661 = vmatpush.msra.mxu2 %v1134_v41 }
  0xd3   :  { %790 = vmatpush.msrb.mxu1 %v1027_v13  ;;  %743 = vmatpush.msrb.mxu0 %v560_v56 }
  0xd4   :  { %664 = vmatpush.msra.mxu2 %v601_v2 }
  0xd5   :  { %792 = vmatpush.msrb.mxu1 %v1029_v18  ;;  %747 = vmatpush.msrb.mxu0 %v566_v9 }
  0xd6   :  { %667 = vmatpush.msra.mxu2 %v607_v16 }
  0xd7   :  { %794 = vmatpush.msrb.mxu1 %v1031_v19  ;;  %751 = vmatpush.msrb.mxu0 %v572_v10 }
  0xd8   :  { %670 = vmatpush.msra.mxu2 %v613_v32 }
  0xd9   :  { %796 = vmatpush.msrb.mxu1 %v1033_v20  ;;  %755 = vmatpush.msrb.mxu0 %v578_v22 }
  0xdb   :  { %798 = vmatpush.msrb.mxu1 %v1054_v31  ;;  %759 = vmatpush.msrb.mxu0 %v584_v40 }
  0xdd   :  { %800 = vmatpush.msrb.mxu1 %v1084_v58  ;;  %763 = vmatpush.msrb.mxu0 %v590_v46 }
  0xdf   :  { %802 = vmatpush.msrb.mxu1 %v1087_v59  ;;  %767 = vmatpush.msrb.mxu0 %v596_v50 }
  0xe1   :  { %804 = vmatpush.msrb.mxu1 %v1089_v60  ;;  %771 = vmatpush.msrb.mxu0 %v602_v8  ;;  %v822_v60 = vlaneseq }
  0xe3   :  { %806 = vmatpush.msrb.mxu1 %v1094_v63  ;;  %775 = vmatpush.msrb.mxu0 %v608_v27  ;;  %v823_v5 = vand.u32 127, %v822_v60 }
  0xe5   :  { %808 = vmatpush.msrb.mxu1 %v1096_v0  ;;  %779 = vmatpush.msrb.mxu0 %v614_v43  ;;  %vm824_vm2 = vcmp.lt.s32.totalorder %v823_v5, 2 }
  0xe7   :  { %810 = vmatpush.msrb.mxu1 %v1117_v15 }
  0xe9   :  { %812 = vmatpush.msrb.mxu1 %v507_v62 }
  0xeb   :  { %814 = vmatpush.msrb.mxu1 %v509_v6 }
  0xed   :  { %816 = vmatpush.msrb.mxu1 %v511_v17 }
 0x130   :  { %v354_v20 = vpop.f32.mrf.mxu0 }
 0x132   :  { %v385_v24 = vpop.f32.mrf.mxu1 }
 0x134   :  { %v316_v12 = vpop.f32.mrf.mxu3 }
 0x13c   :  { %v255_v13 = vpop.f32.mrf.mxu2  ;;  %v459_v30 = vpop.f32.mrf.mxu3 }
 0x13d   :  { %v256_v18 = vadd.f32 %v874_v11, %v255_v13 }
 0x13f   :  { %v317_v19 = vadd.f32 %v316_v12, %v256_v18 }
 0x141   :  { %v355_v23 = vadd.f32 %v354_v20, %v317_v19 }
 0x143   :  { %v386_v25 = vadd.f32 %v385_v24, %v355_v23 }
 0x144   :  { %v430_v28 = vpop.f32.mrf.mxu2 }
 0x145   :  { %v431_v29 = vadd.f32 %v430_v28, %v386_v25 }
 0x147   :  { %v460_v31 = vadd.f32 %v459_v30, %v431_v29 }
 0x149   :  { %v462_v33 = vmax.f32 %v460_v31, 0.0 }
 0x14b   :  { %v513_v34 = vand.u32 4294901760, %v462_v33 }
 0x14d   :  { %v514_v35 = vsub.f32 %v462_v33, %v513_v34  ;;  %619 = vmatmul.f32.vlgmr.msra.gmra.mxu1 %v513_v34 }
 0x14f   :  { %673 = vmatmul.f32.vlgmr.msra.gmra.mxu2 %v514_v35  ;;  %v515_v37 = vand.u32 4294901760, %v514_v35 }
 0x151   :  { %712 = vmatmul.f32.vlgmr.msra.gmra.mxu3 %v515_v37  ;;  %v516_v38 = vsub.f32 %v514_v35, %v515_v37 }
 0x153   :  { %v517_v39 = vand.u32 4294901760, %v516_v38 }
 0x155   :  { %518 = vmatmul.f32.vlgmr.msra.gmra.mxu0 %v517_v39  ;;  %818 = vmatmul.f32.vlgmr.msrb.gmra.mxu1 %v513_v34 }
 0x15d   :  { %781 = vmatmul.f32.vlgmr.msrb.gmra.mxu0 %v513_v34 }
 0x1ca   :  { %v620_v56 = vpop.f32.mrf.mxu1 }
 0x1d2   :  { %v519_v58 = vpop.f32.mrf.mxu0  ;;  %v674_v0 = vpop.f32.mrf.mxu2 }
 0x1d3   :  { %v520_v59 = vadd.f32 %v875_v45, %v519_v58  ;;  %v819_v15 = vpop.f32.mrf.mxu1 }
 0x1d4   :  { %v713_v4 = vpop.f32.mrf.mxu3 }
 0x1d5   :  { %v621_v63 = vadd.f32 %v620_v56, %v520_v59 }
 0x1d7   :  { %v675_v3 = vadd.f32 %v674_v0, %v621_v63 }
 0x1d9   :  { %v714_v9 = vadd.f32 %v713_v4, %v675_v3 }
 0x1da   :  { %v782_v10 = vpop.f32.mrf.mxu0 }
 0x1db   :  { %v783_v14 = vadd.f32 %v782_v10, %v714_v9 }
 0x1dd   :  { %v820_v22 = vadd.f32 %v819_v15, %v783_v14 }
 0x1df   :  { %v825_v26 = vsel %vm824_vm2, %v820_v22, -inf }
 0x1e0   :  { %826 = vmax.xlane.f32.xlu0 %v825_v26 }
 0x253   :  { %v827_v40 = vpop.xlane.xlu0 %826 }
 0x254   :  { %v828_v41 = vsub.f32 %v825_v26, %v827_v40 }
 0x256   :  { %v829_v46 = vmul.f32 1.442695, %v828_v41 }
 0x258   :  { %876 = vpow2.f32 %v829_v46 }
 0x25e   :  { %v877_v49 = vpop.eup %876 }
 0x25f   :  { %831 = vadd.xlane.f32.xlu0 %v877_v49 }
 0x2d2   :  { %v832_v50 = vpop.xlane.xlu0 %831 }
 0x2d3   :  { %878 = vrcp.f32 %v832_v50  ;;  %v844_v54 = vand.u32 2147483648, %v832_v50  ;;  %v842_v57 = vand.u32 2147483647, %v832_v50  ;;  %vm838_vm4 = vweird.f32 %v832_v50 }
 0x2d5   :  { %v845_v62 = vor.u32 1.1754944e-38, %v844_v54  ;;  %vm843_vm6 = vcmp.eq.f32.partialorder %v842_v57, 8.507059e+37 }
 0x2d9   :  { %v879_v51 = vpop.eup %878 }
 0x2da   :  { %v834_v52 = vmul.f32 %v879_v51, %v832_v50  ;;  %vm839_vm3 = vweird.f32 %v879_v51 }
 0x2db   :  { %vm840_vm5 = vmor %vm838_vm4, %vm839_vm3 }
 0x2dc   :  { %v835_v53 = vsub.f32 1.0, %v834_v52 }
 0x2de   :  { %v836_v55 = vmul.f32 %v879_v51, %v835_v53 }
 0x2e0   :  { %v837_v61 = vadd.f32 %v879_v51, %v836_v55 }
 0x2e2   :  { %v841_v1 = vsel %vm840_vm5, %v879_v51, %v837_v61 }
 0x2e3   :  { %v846_v2 = vsel %vm843_vm6, %v845_v62, %v841_v1 }
 0x2e4   :  { %v847_v6 = vmul.f32 %v877_v49, %v846_v2 }
 0x2e6   :  { %v848_v7 = vsel %vm824_vm2, %v847_v6, %v820_v22 }
 0x2e7   :  { %849 = vst [vmem:[#allocation7] sm:$0xff] %v848_v7 }
 0x2e8   :  { %860 = dma.vmem_to_hbm [thread:$0]  %s856_s1, 128, %s858_s23, [#allocation4]  }
 0x2e9   :  { %956 = dma.done.wait [#allocation4], 128  }
 0x2ea   :  { %957 = vsyncadd [#allocation4], 4294967168 }
 0x2eb   :  { %865 = vsyncpa [#allocation3], 1 }
 0x2ec   :  { %866 = vsyncpa [#allocation6], 1 }
 0x2ed   :  { %867 = vsyncpa [#allocation4], 1 }

</bundles_post_ra>
